<compile_context>
chip_gen: v7x
topology: tpu7x:2x2x1
jax: 0.10.0
libtpu: 0.0.40
codegen_flags: <defaults>
</compile_context>

<pallas_src>
import functools

import jax
import jax.numpy as jnp
from jax import lax
from jax.experimental import pallas as pl
from jax.experimental.pallas import tpu as pltpu


def _round_up(x, m):
    return (x + m - 1) // m * m


# ----------------------------------------------------------------------------
# Tile selection (divisor-based so padding copies are avoided where possible)
# ----------------------------------------------------------------------------
def _pick_tm(M, t_max=512):
    """Largest multiple-of-8 divisor of M <= t_max; >=2 tiles when M >= 256."""
    if M < 8 or M % 8 != 0:
        tm = min(t_max, _round_up(M, 8))
        return tm, _round_up(M, tm)
    cap = min(t_max, M if M < 256 else M // 2)   # >=2 M tiles for v7x megacore
    tm = 8
    for t in range(8, cap + 1, 8):
        if M % t == 0:
            tm = t
    return tm, M


def _pick_tk(K, t_max=1024):
    """Full K when it fits; else largest multiple-of-128 tile (pad if needed)."""
    if K <= t_max:
        return K, K
    tk = 128
    for t in range(128, t_max + 1, 128):
        if K % t == 0:
            tk = t
    return tk, _round_up(K, tk)


# ----------------------------------------------------------------------------
# Fused batched matmul + bias + activation kernel (the hot path of every layer)
#   x: (G, M, K) @ w: (G, K, N) + b -> act(.)  with f32 accumulation on-chip.
# ----------------------------------------------------------------------------
def _bmm_bias_act_kernel(x_ref, w_ref, b_ref, o_ref, acc_ref, *, activation):
    # grid = (G, M tiles, N tiles, K tiles); K (reduction) is last/"arbitrary".
    k = pl.program_id(3)

    @pl.when(k == 0)
    def _init():
        acc_ref[...] = jnp.zeros_like(acc_ref)

    acc_ref[...] += jnp.dot(x_ref[0], w_ref[0],
                            preferred_element_type=jnp.float32)

    @pl.when(k == pl.num_programs(3) - 1)
    def _finalize():
        y = acc_ref[...] + b_ref[0]            # f32 epilogue (v5e-safe)
        if activation == "leaky_relu":
            y = jnp.maximum(y, 0.2 * y)        # LeakyReLU(0.2): one mul + max
        elif activation == "tanh":
            y = jnp.tanh(y)                    # EUP
        # Masked store of only the valid output columns (small C_out layers).
        o_ref[0] = y[:, : o_ref.shape[-1]].astype(o_ref.dtype)


def fused_matmul_bias_act(x, w, b, *, activation, out_dtype,
                          tm_max=512, tk_max=1024, tn_max=512,
                          resident_weight_bytes=4 * 1024 * 1024):
    """x: (G, M, K), w: (G, K, N), b: (G, N) -> act(x @ w + b): (G, M, N)."""
    G, M, K = x.shape
    Gw, Kw, N = w.shape
    assert Gw == G and Kw == K and b.shape == (G, N)

    # ---- lanes / N ---------------------------------------------------------
    if N % 128 == 0:
        Np = N
        masked_out = False
    else:
        Np = _round_up(N, 128)
        masked_out = Np <= tn_max      # single lane-block; masked vst of N cols

    # ---- weight-resident path: whole (K, Np) weight as a single block so it
    #      is DMA'd once per matmul (constant index across M tiles), else tile.
    if K * Np * 2 <= resident_weight_bytes and K <= 4096:
        tk, Kp = K, K
        tn = Np
    else:
        tk, Kp = _pick_tk(K, tk_max)
        tn = 128
        for t in range(128, min(tn_max, Np) + 1, 128):
            if Np % t == 0:
                tn = t

    tm, Mp = _pick_tm(M, tm_max)

    n_out = N if (masked_out or Np == N) else Np       # output array columns
    out_block_n = tn if n_out == Np else n_out          # output block lane width

    # ---- operands: bf16 for the MXU, zero-pad only when unavoidable ---------
    xp = x.astype(jnp.bfloat16)
    if (Mp, Kp) != (M, K):
        xp = jnp.pad(xp, ((0, 0), (0, Mp - M), (0, Kp - K)))
    wp = w.astype(jnp.bfloat16)
    if (Kp, Np) != (K, N):
        wp = jnp.pad(wp, ((0, 0), (0, Kp - K), (0, Np - N)))
    bp = b.astype(jnp.float32).reshape(G, 1, N)
    if Np != N:
        bp = jnp.pad(bp, ((0, 0), (0, 0), (0, Np - N)))

    grid = (G, Mp // tm, Np // tn, Kp // tk)
    kernel = functools.partial(_bmm_bias_act_kernel, activation=activation)

    cost = pl.CostEstimate(
        flops=2 * G * Mp * Kp * Np,
        transcendentals=(G * Mp * Np if activation == "tanh" else 0),
        bytes_accessed=(xp.size * 2 + wp.size * 2 + bp.size * 4
                        + G * Mp * n_out * jnp.dtype(out_dtype).itemsize),
    )

    out = pl.pallas_call(
        kernel,
        out_shape=jax.ShapeDtypeStruct((G, Mp, n_out), out_dtype),
        grid_spec=pltpu.PrefetchScalarGridSpec(
            num_scalar_prefetch=0,
            grid=grid,
            in_specs=[
                pl.BlockSpec((1, tm, tk), lambda g, i, j, k: (g, i, k)),
                pl.BlockSpec((1, tk, tn), lambda g, i, j, k: (g, k, j)),
                pl.BlockSpec((1, 1, tn), lambda g, i, j, k: (g, 0, j)),
            ],
            out_specs=pl.BlockSpec((1, tm, out_block_n),
                                   lambda g, i, j, k: (g, i, j)),
            scratch_shapes=[pltpu.VMEM((tm, tn), jnp.float32)],
        ),
        compiler_params=pltpu.CompilerParams(
            dimension_semantics=("parallel", "parallel", "parallel", "arbitrary"),
            vmem_limit_bytes=32 * 1024 * 1024),
        cost_estimate=cost,
    )(xp, wp, bp)

    return out[:, :M, :N]


# ----------------------------------------------------------------------------
# NHWC im2col helpers (patch K-order is (kh, kw, c): C stays in the lane dim)
# ----------------------------------------------------------------------------
def _im2col_nhwc(x, ks, st, pd):
    """x: (N, H, W, C) -> patches (N*OH*OW, ks*ks*C), plus (OH, OW)."""
    N, H, W, C = x.shape
    xp = jnp.pad(x, ((0, 0), (pd, pd), (pd, pd), (0, 0)))
    OH = (H + 2 * pd - ks) // st + 1
    OW = (W + 2 * pd - ks) // st + 1
    cols = []
    for kh in range(ks):
        for kw in range(ks):
            sl = lax.slice(
                xp,
                (0, kh, kw, 0),
                (N, kh + st * (OH - 1) + 1, kw + st * (OW - 1) + 1, C),
                (1, st, st, 1),
            )
            cols.append(sl)                                  # (N, OH, OW, C)
    patches = jnp.concatenate(cols, axis=-1)                 # (N, OH, OW, ks*ks*C)
    return patches.reshape(N * OH * OW, ks * ks * C), OH, OW


# ----------------------------------------------------------------------------
# Phase (sub-pixel) decomposition of ConvTranspose2d(ks=4, st=2, pd=1):
# output parity phase (py, px) only uses the 2x2 tap subset
#   kh = 3 - py - 2*dh, kw = 3 - px - 2*dw   (dh, dw in {0, 1})
# on the input window rows {m-1, m} (py=0) / {m, m+1} (py=1) and likewise for
# columns -> 4 dense stride-1 2x2 matmuls, no dilation zeros.
# ----------------------------------------------------------------------------
def _cup_phase_patches(x):
    """x: (N, H, W, C) -> (4, N*H*W, 4*C); phase order g = py*2 + px."""
    N, H, W, C = x.shape
    phases = []
    for py in range(2):
        for px in range(2):
            xp = jnp.pad(x, ((0, 0), (1 - py, py), (1 - px, px), (0, 0)))
            cols = [xp[:, dh:dh + H, dw:dw + W, :]
                    for dh in range(2) for dw in range(2)]
            p = jnp.concatenate(cols, axis=-1).reshape(N * H * W, 4 * C)
            phases.append(p)
    return jnp.stack(phases, axis=0)


def _cup_phase_weights(weight):
    """weight: (C_in, C_out, 4, 4) torch ConvTranspose2d -> (4, 4*C_in, C_out)."""
    C_in, C_out = weight.shape[:2]
    mats = []
    for py in range(2):
        for px in range(2):
            taps = [weight[:, :, 3 - py - 2 * dh, 3 - px - 2 * dw]
                    for dh in range(2) for dw in range(2)]     # each (C_in, C_out)
            mats.append(jnp.stack(taps, axis=0).reshape(4 * C_in, C_out))
    return jnp.stack(mats, axis=0)


# ----------------------------------------------------------------------------
# Layer wrappers: NHWC in / NHWC out, bf16 activations between layers.
# (groups=1, output_padding=0 assumed -- matches the unet512 modules.)
# ----------------------------------------------------------------------------
@jax.jit
def cdown_nhwc(x, weight, bias):
    """Conv2d(4, st=2, pd=1) + LeakyReLU(0.2). weight: (C_out, C_in, 4, 4)."""
    n = x.shape[0]
    C_out = weight.shape[0]
    patches, OH, OW = _im2col_nhwc(x.astype(jnp.bfloat16), 4, 2, 1)
    w_mat = weight.transpose(2, 3, 1, 0).reshape(-1, C_out)   # K=(kh,kw,c_in)
    out = fused_matmul_bias_act(patches[None], w_mat[None], bias[None],
                                activation="leaky_relu", out_dtype=jnp.bfloat16)
    return out.reshape(n, OH, OW, C_out)


@jax.jit
def cup_nhwc(x, weight, bias):
    """ConvTranspose2d(4, st=2, pd=1) + LeakyReLU(0.2), phase-decomposed.

    x: (N, H, W, C_in), weight: (C_in, C_out, 4, 4) (PyTorch layout).
    """
    N, H, W, C_in = x.shape
    C_out = weight.shape[1]
    patches = _cup_phase_patches(x.astype(jnp.bfloat16))       # (4, N*H*W, 4*C_in)
    w_phase = _cup_phase_weights(weight)                        # (4, 4*C_in, C_out)
    b4 = jnp.broadcast_to(bias[None, :], (4, C_out))
    out = fused_matmul_bias_act(patches, w_phase, b4,
                                activation="leaky_relu", out_dtype=jnp.bfloat16)
    out = out.reshape(2, 2, N, H, W, C_out)                    # (py, px, ...)
    out = out.transpose(2, 3, 0, 4, 1, 5).reshape(N, 2 * H, 2 * W, C_out)
    return out


@jax.jit
def head_nhwc(x, weight, bias):
    """ConvTranspose2d(3, st=1, pd=1) + Tanh (u19/u29). weight: (C_in, 3, 3, 3)."""
    n = x.shape[0]
    C_out = weight.shape[1]
    # stride-1 transposed conv == conv with spatially-flipped, channel-swapped kernel
    w_conv = jnp.flip(weight, axis=(2, 3)).transpose(1, 0, 2, 3)  # (C_out, C_in, 3, 3)
    patches, OH, OW = _im2col_nhwc(x.astype(jnp.bfloat16), 3, 1, 1)
    w_mat = w_conv.transpose(2, 3, 1, 0).reshape(-1, C_out)
    out = fused_matmul_bias_act(patches[None], w_mat[None], bias[None],
                                activation="tanh", out_dtype=jnp.float32)
    return out.reshape(n, OH, OW, C_out)


# ----------------------------------------------------------------------------
# Pure-JAX NCHW references (exactly the PyTorch layer semantics)
# ----------------------------------------------------------------------------
def _cdown_reference(x, weight, bias):
    y = lax.conv_general_dilated(
        x, weight, window_strides=(2, 2), padding=[(1, 1), (1, 1)],
        dimension_numbers=("NCHW", "OIHW", "NCHW"))
    y = y + bias.reshape(1, -1, 1, 1)
    return jnp.maximum(y, 0.2 * y)


def _cup_reference(x, weight, bias):
    w_conv = jnp.flip(weight, axis=(2, 3)).transpose(1, 0, 2, 3)
    y = lax.conv_general_dilated(
        x, w_conv, window_strides=(1, 1), padding=[(2, 2), (2, 2)],
        lhs_dilation=(2, 2), dimension_numbers=("NCHW", "OIHW", "NCHW"))
    y = y + bias.reshape(1, -1, 1, 1)
    return jnp.maximum(y, 0.2 * y)


def _head_reference(x, weight, bias):
    w_conv = jnp.flip(weight, axis=(2, 3)).transpose(1, 0, 2, 3)
    y = lax.conv_general_dilated(
        x, w_conv, window_strides=(1, 1), padding=[(1, 1), (1, 1)],
        dimension_numbers=("NCHW", "OIHW", "NCHW"))
    return jnp.tanh(y + bias.reshape(1, -1, 1, 1))


if __name__ == "__main__":
    key = jax.random.PRNGKey(0)
    k = jax.random.split(key, 8)

    def uinit(kk, shape, fan_in):
        bound = 1.0 / (fan_in ** 0.5)
        return jax.random.uniform(kk, shape, minval=-bound, maxval=bound,
                                  dtype=jnp.float32)

    def to_nhwc(a):
        return jnp.transpose(a, (0, 2, 3, 1))

    def to_nchw(a):
        return jnp.transpose(a, (0, 3, 1, 2))

    # bf16 MXU operands / bf16 inter-layer activations with f32 accumulation
    # -> relaxed tolerance vs f32 reference.  Per-layer checks use the kernel's
    # own (bf16) output as the reference's input, so errors don't compound.
    ATOL = RTOL = 5e-2

    N, in_c, H, W = 2, 4, 16, 16
    out_c, up_c = 8, 4

    x = jax.random.normal(k[0], (N, in_c, H, W), dtype=jnp.float32)
    x_bf = x.astype(jnp.bfloat16)

    w_d = uinit(k[1], (out_c, in_c, 4, 4), in_c * 16)      # Conv2d weight
    b_d = uinit(k[2], (out_c,), in_c * 16)
    w_u = uinit(k[3], (out_c, up_c, 4, 4), out_c * 16)     # ConvTranspose2d (C_in, C_out, kh, kw)
    b_u = uinit(k[4], (up_c,), out_c * 16)
    w_h = uinit(k[5], (up_c, 3, 3, 3), up_c * 9)           # head ConvTranspose2d
    b_h = uinit(k[6], (3,), up_c * 9)

    # --- cdown: Conv2d(4 -> 8, ks=4, st=2, pd=1) + LeakyReLU(0.2) ------------
    y1 = jax.block_until_ready(cdown_nhwc(to_nhwc(x_bf), w_d, b_d))
    y1_ref = _cdown_reference(x_bf.astype(jnp.float32), w_d, b_d)
    assert y1.shape == (N, H // 2, W // 2, out_c), y1.shape
    assert jnp.allclose(to_nchw(y1).astype(jnp.float32), y1_ref,
                        atol=ATOL, rtol=RTOL), "cdown mismatch"

    # --- cup: ConvTranspose2d(8 -> 4, ks=4, st=2, pd=1) + LeakyReLU(0.2) -----
    y2 = jax.block_until_ready(cup_nhwc(y1, w_u, b_u))     # consumes bf16 NHWC
    y2_ref = _cup_reference(to_nchw(y1).astype(jnp.float32), w_u, b_u)
    assert y2.shape == (N, H, W, up_c), y2.shape
    assert jnp.allclose(to_nchw(y2).astype(jnp.float32), y2_ref,
                        atol=ATOL, rtol=RTOL), "cup mismatch"

    # --- head: ConvTranspose2d(4 -> 3, ks=3, st=1, pd=1) + Tanh (u19/u29) ----
    y3 = jax.block_until_ready(head_nhwc(y2, w_h, b_h))
    y3_ref = _head_reference(to_nchw(y2).astype(jnp.float32), w_h, b_h)
    assert y3.shape == (N, H, W, 3), y3.shape
    assert jnp.allclose(to_nchw(y3), y3_ref, atol=ATOL, rtol=RTOL), "head mismatch"

    print("KERNEL_OK")
</pallas_src>

<mosaic_0001>
module attributes {stable_mosaic.version = 11 : i64} {
  func.func @_bmm_bias_act_kernel(%arg0: i32, %arg1: i32, %arg2: i32, %arg3: i32, %arg4: memref<1x128x64xbf16, #tpu.memory_space<vmem>>, %arg5: memref<1x64x128xbf16, #tpu.memory_space<vmem>>, %arg6: memref<1x1x128xf32, #tpu.memory_space<vmem>>, %arg7: memref<1x128x8xbf16, #tpu.memory_space<vmem>>, %arg8: memref<128x128xf32, #tpu.memory_space<vmem>>) attributes {dimension_semantics = [#tpu.dimension_semantics<parallel>, #tpu.dimension_semantics<parallel>, #tpu.dimension_semantics<parallel>, #tpu.dimension_semantics<arbitrary>], iteration_bounds = array<i64: 1, 1, 1, 1>, scalar_prefetch = 0 : i64, scratch_operands = 1 : i64, tpu.core_type = #tpu.core_type<tc>, window_params = [{transform_indices = @transform_0, window_bounds = array<i64: 1, 128, 64>}, {transform_indices = @transform_1, window_bounds = array<i64: 1, 64, 128>}, {transform_indices = @transform_2, window_bounds = array<i64: 1, 1, 128>}, {transform_indices = @transform_3, window_bounds = array<i64: 1, 128, 8>}]} {
    %c0_i32 = arith.constant 0 : i32
    %0 = arith.cmpi eq, %arg3, %c0_i32 : i32
    %1 = arith.extui %0 : i1 to i32
    %c0_i32_0 = arith.constant 0 : i32
    %2 = arith.cmpi ne, %1, %c0_i32_0 : i32
    scf.if %2 {
      %cst_12 = arith.constant 0.000000e+00 : f32
      %14 = vector.broadcast %cst_12 : f32 to vector<128x128xf32>
      %c0_13 = arith.constant 0 : index
      %c0_14 = arith.constant 0 : index
      %15 = vector.load %arg8[%c0_13, %c0_14] : memref<128x128xf32, #tpu.memory_space<vmem>>, vector<128x128xf32>
      tpu.vector_store %arg8[%c0_13, %c0_14], %14 {strides = array<i32>} : memref<128x128xf32, #tpu.memory_space<vmem>>, vector<128x128xf32>,
    } else {
    }
    %c0 = arith.constant 0 : index
    %c0_1 = arith.constant 0 : index
    %3 = vector.load %arg8[%c0, %c0_1] : memref<128x128xf32, #tpu.memory_space<vmem>>, vector<128x128xf32>
    %c0_2 = arith.constant 0 : index
    %c0_3 = arith.constant 0 : index
    %c0_4 = arith.constant 0 : index
    %4 = vector.load %arg4[%c0_2, %c0_3, %c0_4] : memref<1x128x64xbf16, #tpu.memory_space<vmem>>, vector<1x128x64xbf16>
    %5 = vector.shape_cast %4 : vector<1x128x64xbf16> to vector<128x64xbf16>
    %c0_5 = arith.constant 0 : index
    %c0_6 = arith.constant 0 : index
    %c0_7 = arith.constant 0 : index
    %6 = vector.load %arg5[%c0_5, %c0_6, %c0_7] : memref<1x64x128xbf16, #tpu.memory_space<vmem>>, vector<1x64x128xbf16>
    %7 = vector.shape_cast %6 : vector<1x64x128xbf16> to vector<64x128xbf16>
    %cst = arith.constant dense<0.000000e+00> : vector<128x128xf32>
    %8 = tpu.matmul %5, %7, %cst {dimension_numbers = #tpu.dot_dimension_numbers<[1], [0], [0], [1], [0, 0, 1, 1], [], []>} : vector<128x64xbf16>, vector<64x128xbf16>, vector<128x128xf32> -> vector<128x128xf32>
    %9 = arith.addf %3, %8 : vector<128x128xf32>
    %c0_8 = arith.constant 0 : index
    %c0_9 = arith.constant 0 : index
    %10 = vector.load %arg8[%c0_8, %c0_9] : memref<128x128xf32, #tpu.memory_space<vmem>>, vector<128x128xf32>
    tpu.vector_store %arg8[%c0_8, %c0_9], %9 {strides = array<i32>} : memref<128x128xf32, #tpu.memory_space<vmem>>, vector<128x128xf32>,
    %c0_i32_10 = arith.constant 0 : i32
    %11 = arith.cmpi eq, %arg3, %c0_i32_10 : i32
    %12 = arith.extui %11 : i1 to i32
    %c0_i32_11 = arith.constant 0 : i32
    %13 = arith.cmpi ne, %12, %c0_i32_11 : i32
    scf.if %13 {
      %c0_12 = arith.constant 0 : index
      %c0_13 = arith.constant 0 : index
      %14 = vector.load %arg8[%c0_12, %c0_13] : memref<128x128xf32, #tpu.memory_space<vmem>>, vector<128x128xf32>
      %c0_14 = arith.constant 0 : index
      %c0_15 = arith.constant 0 : index
      %c0_16 = arith.constant 0 : index
      %15 = vector.load %arg6[%c0_14, %c0_15, %c0_16] : memref<1x1x128xf32, #tpu.memory_space<vmem>>, vector<1x1x128xf32>
      %16 = vector.shape_cast %15 : vector<1x1x128xf32> to vector<1x128xf32>
      %17 = vector.broadcast %16 : vector<1x128xf32> to vector<128x128xf32>
      %18 = arith.addf %14, %17 : vector<128x128xf32>
      %cst_17 = arith.constant 2.000000e-01 : f32
      %19 = vector.broadcast %cst_17 : f32 to vector<128x128xf32>
      %20 = arith.mulf %19, %18 : vector<128x128xf32>
      %21 = arith.maximumf %18, %20 : vector<128x128xf32>
      %22 = vector.extract_strided_slice %21 {offsets = [0, 0], sizes = [128, 8], strides = [1, 1]} : vector<128x128xf32> to vector<128x8xf32>
      %23 = arith.truncf %22 : vector<128x8xf32> to vector<128x8xbf16>
      %c0_18 = arith.constant 0 : index
      %c0_19 = arith.constant 0 : index
      %c0_20 = arith.constant 0 : index
      %24 = vector.load %arg7[%c0_18, %c0_19, %c0_20] : memref<1x128x8xbf16, #tpu.memory_space<vmem>>, vector<1x128x8xbf16>
      %25 = vector.shape_cast %24 : vector<1x128x8xbf16> to vector<128x8xbf16>
      %26 = vector.shape_cast %23 : vector<128x8xbf16> to vector<1x128x8xbf16>
      tpu.vector_store %arg7[%c0_18, %c0_19, %c0_20], %26 {strides = array<i32>} : memref<1x128x8xbf16, #tpu.memory_space<vmem>>, vector<1x128x8xbf16>,
    } else {
    }
    return
  }
  func.func @transform_0(%arg0: i32, %arg1: i32, %arg2: i32, %arg3: i32) -> (i32, i32, i32) {
    %c0_i32 = arith.constant 0 : i32
    return %arg0, %arg1, %arg3 : i32, i32, i32
  }
  func.func @transform_1(%arg0: i32, %arg1: i32, %arg2: i32, %arg3: i32) -> (i32, i32, i32) {
    %c0_i32 = arith.constant 0 : i32
    return %arg0, %arg3, %arg2 : i32, i32, i32
  }
  func.func @transform_2(%arg0: i32, %arg1: i32, %arg2: i32, %arg3: i32) -> (i32, i32, i32) {
    %c0_i32 = arith.constant 0 : i32
    %c0_i32_0 = arith.constant 0 : i32
    return %arg0, %c0_i32, %arg2 : i32, i32, i32
  }
  func.func @transform_3(%arg0: i32, %arg1: i32, %arg2: i32, %arg3: i32) -> (i32, i32, i32) {
    %c0_i32 = arith.constant 0 : i32
    return %arg0, %arg1, %arg2 : i32, i32, i32
  }
}

</mosaic_0001>

<bundles_post_ra>
// kernel: cdown_nhwc.1
= control target key start
LH: loop header
LB: loop body
LE: loop exit
PB: predicated region body
PF: predicated region fallthrough
CT: control target
= control target key end

     0   :  { %vm140_vm0 = vcmask 523264   ;;  %s717_s0 = inlined_call_operand.vmem [shape: bf16[1,128,64], index: 0, kind: input, shape index: {}]   ;;  %s718_s1 = inlined_call_operand.vmem [shape: bf16[1,64,128], index: 1, kind: input, shape index: {}]   ;;  %s719_s2 = inlined_call_operand.vmem [shape: f32[1,1,128], index: 2, kind: input, shape index: {}]   ;;  %s720_s3 = inlined_call_operand.hbm [shape: bf16[1,128,8], index: 3, kind: output, shape index: {}]  }
   0x1   :  { %v565_v0 = vld [vmem:[%s718_s1] sm:$0xff]   ;;  %v566_v1 = vld [vmem:[%s718_s1 + $0x8] sm:$0xff]   ;;  %v567_v2 = vld [vmem:[%s718_s1 + $0x10] sm:$0xff]  }
   0x2   :  { %530 = vmatprep.subr.bf16.mxu0 %v565_v0  ;;  %554 = vmatprep.subr.bf16.mxu1 %v565_v0  ;;  %v569_v3 = vld [vmem:[%s717_s0] sm:$0xff]   ;;  %v568_v5 = vld [vmem:[%s718_s1 + $0x18] sm:$0xff]  }
   0x3   :  { %531 = vmatpush3.bf16.msra.mxu0 %v565_v0  ;;  %558 = vmatpush3.bf16.msra.mxu1 %v565_v0  ;;  %v570_v4 = vld [vmem:[%s717_s0 + $0x20] sm:$0xff]  }
   0x4   :  { %532 = vmatprep.subr.bf16.mxu0 %v566_v1  ;;  %555 = vmatprep.subr.bf16.mxu1 %v566_v1 }
   0x5   :  { %538 = vmatprep.mubr.msk.bf16.mxu0 %vm140_vm0, %v569_v3  ;;  %546 = vmatprep.mubr.msk.bf16.mxu1 %vm140_vm0, %v570_v4 }
   0x7   :  { %533 = vmatpush3.bf16.msra.mxu0 %v566_v1  ;;  %559 = vmatpush3.bf16.msra.mxu1 %v566_v1 }
   0x8   :  { %534 = vmatprep.subr.bf16.mxu0 %v567_v2  ;;  %556 = vmatprep.subr.bf16.mxu1 %v567_v2 }
   0xb   :  { %535 = vmatpush3.bf16.msra.mxu0 %v567_v2  ;;  %560 = vmatpush3.bf16.msra.mxu1 %v567_v2 }
   0xc   :  { %536 = vmatprep.subr.bf16.mxu0 %v568_v5  ;;  %557 = vmatprep.subr.bf16.mxu1 %v568_v5 }
   0xd   :  { %8 = vsyncpa [#allocation4], 0  ;;  %v571_v6 = vld [vmem:[%s717_s0 + $0x8] sm:$0xff]   ;;  %v573_v8 = vld [vmem:[%s717_s0 + $0x10] sm:$0xff]   ;;  %vm432_vm1 = vcmask 60416  }
   0xe   :  { %v572_v7 = vld [vmem:[%s717_s0 + $0x28] sm:$0xff]   ;;  %v574_v9 = vld [vmem:[%s717_s0 + $0x30] sm:$0xff]   ;;  %v575_v10 = vld [vmem:[%s717_s0 + $0x18] sm:$0xff]  }
   0xf   :  { %537 = vmatpush3.bf16.msra.mxu0 %v568_v5  ;;  %561 = vmatpush3.bf16.msra.mxu1 %v568_v5  ;;  %v576_v11 = vld [vmem:[%s717_s0 + $0x38] sm:$0xff]   ;;  %v671_v12 = vld [vmem:[%s719_s2] ss:$0 sm:$0xff]  ;;  %s601_s0 = smov [#allocation3]  }
  0x10   :  { %s454_s2 = sshll.u32 %s601_s0, 4  ;;  %s455_s2 = int_to_ptr.vmem [resolvable:$true] %s454_s2 }
  0x11   :  { %s577_s10 = scalar_lea.vmem %s455_s2, 1024  ;;  %p582_p1 = scmp.lt.s32.totalorder %s455_s2, %s455_s2 }
  0x12   :  { %539 = vmatmul.mubr.msk.bf16.vlgmr.msra.gmra.mrb[0].mxu0 %vm140_vm0, %v571_v6  ;;  %547 = vmatmul.mubr.msk.bf16.vlgmr.msra.gmra.mrb[0].mxu1 %vm140_vm0, %v572_v7  ;;  %p578_p0 = scmp.ne.s32.totalorder %s455_s2, %s577_s10  ;;  %p583_p2 = scmp.lt.s32.totalorder %s577_s10, %s577_s10 }
  0x13   :  { %542 = vmatprep.mubr.msk.bf16.mxu0 %vm140_vm0, %v573_v8  ;;  %550 = vmatprep.mubr.msk.bf16.mxu1 %vm140_vm0, %v574_v9 }
  0x14   :  { %p584_p3 = por %p583_p2, %p582_p1 }
  0x16   :  { %p585_p4 = pnand %p584_p3, %p578_p0 }
  0x1a   :  { %543 = vmatmul.mubr.msk.bf16.gmra.mrb[4].mxu0 %vm140_vm0, %v575_v10  ;;  %551 = vmatmul.mubr.msk.bf16.gmra.mrb[4].mxu1 %vm140_vm0, %v576_v11 }
  0xe5   :  { %v540_v13 = vpop.f32.mrb[0].mxu0  ;;  %v548_v14 = vpop.f32.mrb[0].mxu1 }
  0xe6   :  { %v322_v15 = vadd.f32 %v540_v13, %v671_v12  ;;  %v330_v16 = vadd.f32 %v548_v14, %v671_v12  ;;  %v199_v17 = vpop.f32.mrb[1].mxu0  ;;  %v231_v18 = vpop.f32.mrb[1].mxu1 }
  0xe7   :  { %v320_v19 = vadd.f32 %v671_v12, %v199_v17  ;;  %v328_v20 = vadd.f32 %v671_v12, %v231_v18  ;;  %v541_v21 = vpop.f32.mrb[2].mxu0  ;;  %v549_v22 = vpop.f32.mrb[2].mxu1 }
  0xe8   :  { %v338_v23 = vmul.f32 0.2, %v322_v15  ;;  %v346_v24 = vmul.f32 0.2, %v330_v16  ;;  %v323_v25 = vadd.f32 %v541_v21, %v671_v12  ;;  %v331_v26 = vadd.f32 %v549_v22, %v671_v12  ;;  %v202_v27 = vpop.f32.mrb[3].mxu0  ;;  %v234_v28 = vpop.f32.mrb[3].mxu1 }
  0xe9   :  { %v336_v29 = vmul.f32 0.2, %v320_v19  ;;  %v344_v30 = vmul.f32 0.2, %v328_v20  ;;  %v321_v31 = vadd.f32 %v671_v12, %v202_v27  ;;  %v329_v32 = vadd.f32 %v671_v12, %v234_v28 }
  0xea   :  { %v354_v33 = vmax.f32 %v322_v15, %v338_v23  ;;  %v362_v34 = vmax.f32 %v330_v16, %v346_v24  ;;  %v339_v35 = vmul.f32 0.2, %v323_v25  ;;  %v347_v36 = vmul.f32 0.2, %v331_v26 }
  0xeb   :  { %v352_v37 = vmax.f32 %v320_v19, %v336_v29  ;;  %v360_v38 = vmax.f32 %v328_v20, %v344_v30  ;;  %v337_v39 = vmul.f32 0.2, %v321_v31  ;;  %v345_v40 = vmul.f32 0.2, %v329_v32 }
  0xec   :  { %v504_v41 = vpack.c.bf16 %v354_v33, %v354_v33  ;;  %v512_v42 = vpack.c.bf16 %v362_v34, %v362_v34  ;;  %v355_v43 = vmax.f32 %v323_v25, %v339_v35  ;;  %v363_v44 = vmax.f32 %v331_v26, %v347_v36 }
  0xed   :  { %v502_v45 = vpack.c.bf16 %v352_v37, %v352_v37  ;;  %v510_v46 = vpack.c.bf16 %v360_v38, %v360_v38  ;;  %v353_v47 = vmax.f32 %v321_v31, %v337_v39  ;;  %v361_v48 = vmax.f32 %v329_v32, %v345_v40  ;;  %v544_v49 = vpop.f32.mrb[4].mxu0  ;;  %v552_v50 = vpop.f32.mrb[4].mxu1 }
  0xee   :  { %435 = vst.msk [vmem:[#allocation3 + $0x8] sm:$0xf] %vm432_vm1, %v504_v41  ;;  %443 = vst.msk [vmem:[#allocation3 + $0x28] sm:$0xf] %vm432_vm1, %v512_v42  ;;  %v505_v51 = vpack.c.bf16 %v355_v43, %v355_v43  ;;  %v513_v52 = vpack.c.bf16 %v363_v44, %v363_v44  ;;  %v326_v53 = vadd.f32 %v544_v49, %v671_v12  ;;  %v215_v55 = vpop.f32.mrb[5].mxu0  ;;  %v247_v56 = vpop.f32.mrb[5].mxu1 }
  0xef   :  { %v334_v54 = vadd.f32 %v552_v50, %v671_v12  ;;  %433 = vst.msk [vmem:[#allocation3] sm:$0xf] %vm432_vm1, %v502_v45  ;;  %441 = vst.msk [vmem:[#allocation3 + $0x20] sm:$0xf] %vm432_vm1, %v510_v46  ;;  %v503_v57 = vpack.c.bf16 %v353_v47, %v353_v47  ;;  %v511_v58 = vpack.c.bf16 %v361_v48, %v361_v48  ;;  %v545_v61 = vpop.f32.mrb[6].mxu0  ;;  %v553_v62 = vpop.f32.mrb[6].mxu1 }
  0xf0   :  { %v324_v59 = vadd.f32 %v671_v12, %v215_v55  ;;  %v332_v60 = vadd.f32 %v671_v12, %v247_v56  ;;  %436 = vst.msk [vmem:[#allocation3 + $0xc] sm:$0xf] %vm432_vm1, %v505_v51  ;;  %444 = vst.msk [vmem:[#allocation3 + $0x2c] sm:$0xf] %vm432_vm1, %v513_v52  ;;  %v342_v63 = vmul.f32 0.2, %v326_v53  ;;  %v327_v1 = vadd.f32 %v545_v61, %v671_v12 }
  0xf1   :  { %v350_v0 = vmul.f32 0.2, %v334_v54  ;;  %v335_v2 = vadd.f32 %v553_v62, %v671_v12  ;;  %v218_v3 = vpop.f32.mrb[7].mxu0  ;;  %v250_v4 = vpop.f32.mrb[7].mxu1  ;;  %434 = vst.msk [vmem:[#allocation3 + $0x4] sm:$0xf] %vm432_vm1, %v503_v57 }
  0xf2   :  { %442 = vst.msk [vmem:[#allocation3 + $0x24] sm:$0xf] %vm432_vm1, %v511_v58  ;;  %v340_v5 = vmul.f32 0.2, %v324_v59  ;;  %v348_v6 = vmul.f32 0.2, %v332_v60  ;;  %v325_v7 = vadd.f32 %v671_v12, %v218_v3  ;;  %v333_v8 = vadd.f32 %v671_v12, %v250_v4 }
  0xf3   :  { %v358_v9 = vmax.f32 %v326_v53, %v342_v63  ;;  %v366_v10 = vmax.f32 %v334_v54, %v350_v0  ;;  %v343_v11 = vmul.f32 0.2, %v327_v1  ;;  %v351_v13 = vmul.f32 0.2, %v335_v2 }
  0xf4   :  { %v356_v14 = vmax.f32 %v324_v59, %v340_v5  ;;  %v364_v15 = vmax.f32 %v332_v60, %v348_v6  ;;  %v341_v16 = vmul.f32 0.2, %v325_v7  ;;  %v349_v17 = vmul.f32 0.2, %v333_v8 }
  0xf5   :  { %v508_v18 = vpack.c.bf16 %v358_v9, %v358_v9  ;;  %v516_v19 = vpack.c.bf16 %v366_v10, %v366_v10  ;;  %v359_v20 = vmax.f32 %v327_v1, %v343_v11  ;;  %v367_v21 = vmax.f32 %v335_v2, %v351_v13 }
  0xf6   :  { %v506_v22 = vpack.c.bf16 %v356_v14, %v356_v14  ;;  %v514_v23 = vpack.c.bf16 %v364_v15, %v364_v15  ;;  %v357_v24 = vmax.f32 %v325_v7, %v341_v16  ;;  %v365_v25 = vmax.f32 %v333_v8, %v349_v17 }
  0xf7   :  { %439 = vst.msk [vmem:[#allocation3 + $0x18] sm:$0xf] %vm432_vm1, %v508_v18  ;;  %447 = vst.msk [vmem:[#allocation3 + $0x38] sm:$0xf] %vm432_vm1, %v516_v19  ;;  %v509_v12 = vpack.c.bf16 %v359_v20, %v359_v20  ;;  %v517_v26 = vpack.c.bf16 %v367_v21, %v367_v21 }
  0xf8   :  { %437 = vst.msk [vmem:[#allocation3 + $0x10] sm:$0xf] %vm432_vm1, %v506_v22  ;;  %445 = vst.msk [vmem:[#allocation3 + $0x30] sm:$0xf] %vm432_vm1, %v514_v23  ;;  %v507_v27 = vpack.c.bf16 %v357_v24, %v357_v24  ;;  %v515_v28 = vpack.c.bf16 %v365_v25, %v365_v25 }
  0xf9   :  { %440 = vst.msk [vmem:[#allocation3 + $0x1c] sm:$0xf] %vm432_vm1, %v509_v12  ;;  %448 = vst.msk [vmem:[#allocation3 + $0x3c] sm:$0xf] %vm432_vm1, %v517_v26 }
  0xfa   :  { %438 = vst.msk [vmem:[#allocation3 + $0x14] sm:$0xf] %vm432_vm1, %v507_v27  ;;  %446 = vst.msk [vmem:[#allocation3 + $0x34] sm:$0xf] %vm432_vm1, %v515_v28 }
  0xfb   :  { %588 = shalt.err (!%p585_p4)
}
  0xfc   :  { %s589_s13 = scalar_lea.hbm %s720_s3, 1024 }
  0xfd   :  { %p590_p5 = scmp.ne.s32.totalorder %s720_s3, %s589_s13  ;;  %p593_p6 = scmp.lt.u32.totalorder %s589_s13, %s720_s3 }
  0xff   :  { %p595_p7 = pnand %p593_p6, %p590_p5 }
 0x101   :  { %598 = shalt.err (!%p595_p7)
}
 0x102   :  { %s602_s18 = smov 64   ;;  %s603_s19 = smov 4  }
 0x103   :  { %460 = dma.vmem_to_hbm [thread:$0]  %s455_s2, 1024, %s720_s3, [#allocation4], %s602_s18, %s602_s18, %s603_s19  }
 0x104   :  { %599 = dma.done.wait [#allocation4], 1024  }
 0x105   :  { %600 = vsyncadd [#allocation4], 4294966272 }
 0x106   :  { %464 = vsyncpa [#allocation4], 1 }

</bundles_post_ra>
